<compile_context>
chip_gen: v7x
topology: tpu7x:2x2x1
jax: 0.10.0
libtpu: 0.0.40
codegen_flags: <defaults>
</compile_context>

<pallas_src>
import jax
import jax.numpy as jnp
from jax.experimental import pallas as pl
from jax.experimental.pallas import tpu as pltpu


def _packed_linear_kernel(x_ref, w_ref, b_ref, o_ref):
    # x_ref: (TBP, PF) bf16, w_ref: (PF, PO) bf16, b_ref: (1, PO) f32,
    # o_ref: (TBP, PO) f32
    acc = jnp.dot(x_ref[...], w_ref[...], preferred_element_type=jnp.float32)
    o_ref[...] = (acc + b_ref[...]).astype(o_ref.dtype)


def _choose_tile_rows(bp, tile_rows):
    """Pick the packed-row tile size.

    Small batches get a single full-extent block; larger batches get a tile
    that is a multiple of 16 (bf16 sublane tile), capped at `tile_rows`, and
    sized so the grid has >= 4 steps (2 per TensorCore on v7x + pipelining).
    """
    if bp <= 512:
        return bp
    return min(tile_rows, max(256, (bp // 4) // 16 * 16))


def make_code_clone_detector_forward(w, b, *, tile_rows=2048):
    """Build forward(x) = x @ w + b for w: (F, O), b: (O,).

    Packed weights are precomputed once here (hoisted out of the per-call
    path); the returned callable is jitted so wrapper-side casts/reshapes fuse.
    """
    F, O = w.shape
    P = 128 // F if (F <= 128 and 128 % F == 0) else 1
    PF, PO = P * F, P * O

    if P > 1:
        # Block-diagonal weight: P copies of w along the diagonal -> (PF, PO).
        w_bd = jnp.kron(jnp.eye(P, dtype=jnp.float32), w).astype(jnp.bfloat16)
        b_bd = jnp.tile(b, P).reshape(1, PO).astype(jnp.float32)
    else:
        w_bd = w.astype(jnp.bfloat16)
        b_bd = b.reshape(1, O).astype(jnp.float32)

    w_bf = w.astype(jnp.bfloat16)   # for the tiny <P-sample tail fallback
    b_f32 = b.astype(jnp.float32)

    def forward(x):
        B = x.shape[0]
        B_main = (B // P) * P
        outs = []

        if B_main > 0:
            BP = B_main // P
            # Slice + bf16 cast + reshape fuse into one pass under jit
            # (no jnp.pad full-array copies anywhere).
            xp = x[:B_main].astype(jnp.bfloat16).reshape(BP, PF)

            TBP = _choose_tile_rows(BP, tile_rows)
            grid = (pl.cdiv(BP, TBP),)   # partial final block masked by Pallas

            out_packed = pl.pallas_call(
                _packed_linear_kernel,
                out_shape=jax.ShapeDtypeStruct((BP, PO), jnp.float32),
                grid_spec=pltpu.PrefetchScalarGridSpec(
                    num_scalar_prefetch=0,
                    grid=grid,
                    in_specs=[
                        # Streamed batch tile (double-buffered by the pipeline).
                        pl.BlockSpec((TBP, PF), lambda i: (i, 0)),
                        # Constant block index -> loaded once, stays resident.
                        pl.BlockSpec((PF, PO), lambda i: (0, 0)),
                        pl.BlockSpec((1, PO), lambda i: (0, 0)),
                    ],
                    out_specs=pl.BlockSpec((TBP, PO), lambda i: (i, 0)),
                ),
                compiler_params=pltpu.CompilerParams(
                    # Independent batch tiles -> sharded across TensorCores on v7x.
                    dimension_semantics=("parallel",),
                ),
            )(xp, w_bd, b_bd)

            outs.append(out_packed.reshape(B_main, O))

        if B_main < B:
            # Ragged tail (< P samples): negligible, do it on the VPU in plain jnp.
            tail = x[B_main:].astype(jnp.bfloat16)
            outs.append(
                jnp.dot(tail, w_bf, preferred_element_type=jnp.float32) + b_f32
            )

        return outs[0] if len(outs) == 1 else jnp.concatenate(outs, axis=0)

    return jax.jit(forward)


if __name__ == "__main__":
    # Module-consistent shapes: input_dim=16 -> in_features = 2*16 = 32, out = 2.
    input_dim = 16
    in_features = 2 * input_dim      # 32
    out_features = 2

    key = jax.random.PRNGKey(0)
    kw, kb, kx1, kx2 = jax.random.split(key, 4)

    # nn.Linear default init: U(-1/sqrt(in_features), 1/sqrt(in_features)).
    bound = 1.0 / jnp.sqrt(jnp.float32(in_features))
    w = jax.random.uniform(kw, (in_features, out_features), jnp.float32,
                           minval=-bound, maxval=bound)
    b = jax.random.uniform(kb, (out_features,), jnp.float32,
                           minval=-bound, maxval=bound)

    forward = make_code_clone_detector_forward(w, b)

    def ref_bf16(x):
        # Same numerics as the kernel (bf16 inputs, f32 accumulation).
        return jnp.dot(x.astype(jnp.bfloat16), w.astype(jnp.bfloat16),
                       preferred_element_type=jnp.float32) + b

    # 1) Batch exercising grid > 1, a partial final block, and the ragged tail:
    #    B = 4103 -> B_main = 4100, BP = 1025 packed rows, TBP = 256, grid = 5
    #    (last block partial), tail = 3 samples.
    x_big = jax.random.normal(kx1, (4103, in_features), jnp.float32)
    out_big = jax.block_until_ready(forward(x_big))
    assert out_big.shape == (4103, out_features)
    assert jnp.allclose(out_big, ref_bf16(x_big), atol=1e-3, rtol=1e-3)
    # Loose check vs. the f32 PyTorch-equivalent reference (bf16 input rounding).
    assert jnp.allclose(out_big, x_big @ w + b, atol=5e-2, rtol=5e-2)

    # 2) Tiny ragged batch: single full-extent block + tail path.
    x_small = jax.random.normal(kx2, (7, in_features), jnp.float32)
    out_small = jax.block_until_ready(forward(x_small))
    assert out_small.shape == (7, out_features)
    assert jnp.allclose(out_small, ref_bf16(x_small), atol=1e-3, rtol=1e-3)

    print("KERNEL_OK")
</pallas_src>

<mosaic_0001>
module attributes {stable_mosaic.version = 11 : i64} {
  func.func @_packed_linear_kernel(%arg0: i32, %arg1: memref<256x128xbf16, #tpu.memory_space<vmem>>, %arg2: memref<128x8xbf16, #tpu.memory_space<vmem>>, %arg3: memref<1x8xf32, #tpu.memory_space<vmem>>, %arg4: memref<256x8xf32, #tpu.memory_space<vmem>>) attributes {dimension_semantics = [#tpu.dimension_semantics<parallel>], iteration_bounds = array<i64: 5>, scalar_prefetch = 0 : i64, scratch_operands = 0 : i64, tpu.core_type = #tpu.core_type<tc>, window_params = [{transform_indices = @transform_0, window_bounds = array<i64: 256, 128>}, {pipeline_mode = #tpu.pipeline_mode<synchronous>, transform_indices = @transform_1, window_bounds = array<i64: 128, 8>}, {pipeline_mode = #tpu.pipeline_mode<synchronous>, transform_indices = @transform_2, window_bounds = array<i64: 1, 8>}, {transform_indices = @transform_3, window_bounds = array<i64: 256, 8>}]} {
    %c0 = arith.constant 0 : index
    %c0_0 = arith.constant 0 : index
    %0 = vector.load %arg1[%c0, %c0_0] : memref<256x128xbf16, #tpu.memory_space<vmem>>, vector<256x128xbf16>
    %c0_1 = arith.constant 0 : index
    %c0_2 = arith.constant 0 : index
    %1 = vector.load %arg2[%c0_1, %c0_2] : memref<128x8xbf16, #tpu.memory_space<vmem>>, vector<128x8xbf16>
    %cst = arith.constant dense<0.000000e+00> : vector<256x8xf32>
    %2 = tpu.matmul %0, %1, %cst {dimension_numbers = #tpu.dot_dimension_numbers<[1], [0], [0], [1], [0, 0, 1, 1], [], []>} : vector<256x128xbf16>, vector<128x8xbf16>, vector<256x8xf32> -> vector<256x8xf32>
    %c0_3 = arith.constant 0 : index
    %c0_4 = arith.constant 0 : index
    %3 = vector.load %arg3[%c0_3, %c0_4] : memref<1x8xf32, #tpu.memory_space<vmem>>, vector<1x8xf32>
    %4 = vector.broadcast %3 : vector<1x8xf32> to vector<256x8xf32>
    %5 = arith.addf %2, %4 : vector<256x8xf32>
    %c0_5 = arith.constant 0 : index
    %c0_6 = arith.constant 0 : index
    %6 = vector.load %arg4[%c0_5, %c0_6] : memref<256x8xf32, #tpu.memory_space<vmem>>, vector<256x8xf32>
    tpu.vector_store %arg4[%c0_5, %c0_6], %5 {strides = array<i32>} : memref<256x8xf32, #tpu.memory_space<vmem>>, vector<256x8xf32>,
    return
  }
  func.func @transform_0(%arg0: i32) -> (i32, i32) {
    %c0_i32 = arith.constant 0 : i32
    %c0_i32_0 = arith.constant 0 : i32
    return %arg0, %c0_i32 : i32, i32
  }
  func.func @transform_1(%arg0: i32) -> (i32, i32) {
    %c0_i32 = arith.constant 0 : i32
    %c0_i32_0 = arith.constant 0 : i32
    %c0_i32_1 = arith.constant 0 : i32
    return %c0_i32, %c0_i32_0 : i32, i32
  }
  func.func @transform_2(%arg0: i32) -> (i32, i32) {
    %c0_i32 = arith.constant 0 : i32
    %c0_i32_0 = arith.constant 0 : i32
    %c0_i32_1 = arith.constant 0 : i32
    return %c0_i32, %c0_i32_0 : i32, i32
  }
  func.func @transform_3(%arg0: i32) -> (i32, i32) {
    %c0_i32 = arith.constant 0 : i32
    %c0_i32_0 = arith.constant 0 : i32
    return %arg0, %c0_i32 : i32, i32
  }
}

</mosaic_0001>

<bundles_post_ra>
// kernel: forward.1
= control target key start
LH: loop header
LB: loop body
LE: loop exit
PB: predicated region body
PF: predicated region fallthrough
CT: control target
= control target key end

     0   :  { %s1285_s12 = smov 0   ;;  %s1287_s13 = smov 0   ;;  %s1607_s0 = inlined_call_operand.vmem [shape: bf16[1025,128], index: 0, kind: input, shape index: {}]   ;;  %s1608_s1 = inlined_call_operand.vmem [shape: bf16[128,8], index: 1, kind: input, shape index: {}]   ;;  %s1609_s2 = inlined_call_operand.vmem [shape: f32[1,8], index: 2, kind: input, shape index: {}]   ;;  %s1610_s3 = inlined_call_operand.vmem [shape: f32[1025,8], index: 3, kind: output, shape index: {}]  }
   0x1   :  { %s1289_s14 = smov 0  }
   0x2 LB: > { %s1298_s15 = sadd.s32 4294967295, %s1231_s14   ;;  %s1300_s16 = sadd.s32 1, %s1231_s14   ;;  %s1231_s14 = sphi %s1289_s14, %s1619_s14   ;;  %s1227_s13 = sphi %s1287_s13, %s1618_s13   ;;  %s1223_s12 = sphi %s1285_s12, %s1617_s12  }
   0x3   : > { %s85_s17 = ssub.s32 %s1231_s14, %s1300_s16  ;;  %s88_s18 = sadd.s32 1, %s1227_s13 }
   0x4   : > { %p86_p0 = scmp.eq.s32.totalorder %s85_s17, 0  ;;  %p98_p1 = scmp.ne.s32.totalorder %s1227_s13, %s1223_s12 }
   0x5   : > { %p99_p2 = scmp.eq.s32.totalorder %s1298_s15, 4  ;;  %p928_p3 = scmp.ge.s32.totalorder %s1231_s14, 1 }
   0x6   : > { %s1308_s19 = scalar_select %p86_p0, %s1227_s13, %s88_s18  }
   0x7   : > { %p1310_p4 = por %p99_p2, %p98_p1  ;;  %p146_p5 = scmp.lt.s32.totalorder %s1231_s14, 6 }
   0x9   : > { %p147_p6 = pnand %p928_p3, %p146_p5 }
   0xa   : > { %v1153_v0 = vld [vmem:[%s1608_s1] sm:$0xff] (!%p147_p6)   ;;  %s1318_s23 = sshll.u32 (!%p147_p6), %s1298_s15, 5  ;;  %v1154_v1 = vld [vmem:[%s1608_s1 + $0x8] sm:$0xff] (!%p147_p6)   ;;  %v1155_v2 = vld [vmem:[%s1608_s1 + $0x10] sm:$0xff] (!%p147_p6)   ;;  %s170_s22 = sand.u32 (!%p147_p6), 1, %s1223_s12   ;;  %vm553_vm0 = vcmask (!%p147_p6), 64512  }
   0xb   : > { %150 = sbr.rel (%p147_p6) target bundleno = 342 (0x156), region = 32  ;;  %p178_p7 = scmp.lt.s32.totalorder (!%p147_p6), %s1318_s23, 128  ;;  %1001 = vmatprep.subr.bf16.mxu0 (!%p147_p6), %v1153_v0  ;;  %1049 = vmatprep.subr.bf16.mxu1 (!%p147_p6), %v1153_v0  ;;  %v1156_v3 = vld [vmem:[%s1608_s1 + $0x18] sm:$0xff] (!%p147_p6)   ;;  %v1157_v6 = vld [vmem:[%s1608_s1 + $0x20] sm:$0xff] (!%p147_p6)   ;;  %v1158_v7 = vld [vmem:[%s1608_s1 + $0x28] sm:$0xff] (!%p147_p6)  }
   0xc   : > { %1002 = vmatpush3.bf16.msra.mxu0 (!%p147_p6), %v1153_v0  ;;  %1057 = vmatpush3.bf16.msra.mxu1 (!%p147_p6), %v1153_v0  ;;  %v1159_v8 = vld [vmem:[%s1608_s1 + $0x30] sm:$0xff] (!%p147_p6)   ;;  %v1160_v9 = vld [vmem:[%s1608_s1 + $0x38] sm:$0xff] (!%p147_p6)   ;;  %s929_s24 = sshll.u32 (!%p147_p6), %s170_s22, 8  ;;  %v1368_v24 = vld [vmem:[%s1609_s2] ss:$0 sm:$0xff] (!%p147_p6) }
   0xd   : > { %1003 = vmatprep.subr.bf16.mxu0 (!%p147_p6), %v1154_v1  ;;  %1050 = vmatprep.subr.bf16.mxu1 (!%p147_p6), %v1154_v1  ;;  %s1374_s12 = scalar_lea.vmem (!%p147_p6), [#allocation2], %s929_s24  }
  0x10   : > { %1004 = vmatpush3.bf16.msra.mxu0 (!%p147_p6), %v1154_v1  ;;  %1058 = vmatpush3.bf16.msra.mxu1 (!%p147_p6), %v1154_v1 }
  0x11   : > { %1005 = vmatprep.subr.bf16.mxu0 (!%p147_p6), %v1155_v2  ;;  %1051 = vmatprep.subr.bf16.mxu1 (!%p147_p6), %v1155_v2 }
  0x12   : > { %s179_s26 = scalar_select %p178_p7, %s1318_s23, 128 }
  0x13   : > { %s594_s27 = ssub.s32 (%p1310_p4), 129, %s1318_s23  ;;  %s974_s28 = sshll.u32 (%p1310_p4), %s1298_s15, 8 }
  0x14   : > { %s931_s29 = sshll.u32 %s179_s26, 2  ;;  %1006 = vmatpush3.bf16.msra.mxu0 %v1155_v2  ;;  %1059 = vmatpush3.bf16.msra.mxu1 %v1155_v2  ;;  %p595_p8 = scmp.lt.s32.totalorder (%p1310_p4), %s594_s27, 32 }
  0x15   : > { %s1331_s5 = scalar_lea.vmem %s1607_s0, %s931_s29  ;;  %1007 = vmatprep.subr.bf16.mxu0 %v1156_v3  ;;  %1052 = vmatprep.subr.bf16.mxu1 %v1156_v3  ;;  %s1475_s4 = scalar_lea.vmem (%p1310_p4), %s1610_s3, %s974_s28  }
  0x16   : > { %v1161_v4 = vld [vmem:[%s1331_s5] sm:$0xff]   ;;  %v1163_v10 = vld [vmem:[%s1331_s5 + $0x8] sm:$0xff]   ;;  %v1165_v12 = vld [vmem:[%s1331_s5 + $0x10] sm:$0xff]  }
  0x17   : > { %v1162_v5 = vld [vmem:[%s1331_s5 + $0x40] sm:$0xff]   ;;  %1017 = vmatprep.mubr.bf16.mxu0 %v1161_v4  ;;  %v1164_v11 = vld [vmem:[%s1331_s5 + $0x48] sm:$0xff]   ;;  %v1166_v13 = vld [vmem:[%s1331_s5 + $0x50] sm:$0xff]  }
  0x18   : > { %1033 = vmatprep.mubr.bf16.mxu1 %v1162_v5  ;;  %1008 = vmatpush3.bf16.msra.mxu0 %v1156_v3  ;;  %v1167_v14 = vld [vmem:[%s1331_s5 + $0x18] sm:$0xff]   ;;  %v1169_v16 = vld [vmem:[%s1331_s5 + $0x20] sm:$0xff]   ;;  %v1171_v18 = vld [vmem:[%s1331_s5 + $0x28] sm:$0xff]  }
  0x19   : > { %1060 = vmatpush3.bf16.msra.mxu1 %v1156_v3  ;;  %1009 = vmatprep.subr.bf16.mxu0 %v1157_v6  ;;  %v1168_v15 = vld [vmem:[%s1331_s5 + $0x58] sm:$0xff]   ;;  %v1170_v17 = vld [vmem:[%s1331_s5 + $0x60] sm:$0xff]   ;;  %v1172_v19 = vld [vmem:[%s1331_s5 + $0x68] sm:$0xff]  }
  0x1a   : > { %1053 = vmatprep.subr.bf16.mxu1 %v1157_v6  ;;  %v1173_v20 = vld [vmem:[%s1331_s5 + $0x30] sm:$0xff]   ;;  %v1175_v22 = vld [vmem:[%s1331_s5 + $0x38] sm:$0xff]  }
  0x1b   : > { %v1174_v21 = vld [vmem:[%s1331_s5 + $0x70] sm:$0xff]   ;;  %v1176_v23 = vld [vmem:[%s1331_s5 + $0x78] sm:$0xff]  }
  0x1c   : > { %1010 = vmatpush3.bf16.msra.mxu0 %v1157_v6 }
  0x1d   : > { %1061 = vmatpush3.bf16.msra.mxu1 %v1157_v6  ;;  %1011 = vmatprep.subr.bf16.mxu0 %v1158_v7 }
  0x1e   : > { %1054 = vmatprep.subr.bf16.mxu1 %v1158_v7 }
  0x20   : > { %1012 = vmatpush3.bf16.msra.mxu0 %v1158_v7 }
  0x21   : > { %1062 = vmatpush3.bf16.msra.mxu1 %v1158_v7  ;;  %1013 = vmatprep.subr.bf16.mxu0 %v1159_v8 }
  0x22   : > { %1055 = vmatprep.subr.bf16.mxu1 %v1159_v8 }
  0x24   : > { %1014 = vmatpush3.bf16.msra.mxu0 %v1159_v8 }
  0x25   : > { %1063 = vmatpush3.bf16.msra.mxu1 %v1159_v8  ;;  %1015 = vmatprep.subr.bf16.mxu0 %v1160_v9 }
  0x26   : > { %1056 = vmatprep.subr.bf16.mxu1 %v1160_v9 }
  0x28   : > { %1016 = vmatpush3.bf16.msra.mxu0 %v1160_v9 }
  0x29   : > { %1064 = vmatpush3.bf16.msra.mxu1 %v1160_v9 }
  0x2b   : > { %1018 = vmatmul.mubr.bf16.vlgmr.msra.gmra.mrb[0].mxu0 %v1163_v10 }
  0x2c   : > { %1034 = vmatmul.mubr.bf16.vlgmr.msra.gmra.mrb[0].mxu1 %v1164_v11  ;;  %1021 = vmatprep.mubr.bf16.mxu0 %v1165_v12 }
  0x2d   : > { %1037 = vmatprep.mubr.bf16.mxu1 %v1166_v13 }
  0x33   : > { %1022 = vmatmul.mubr.bf16.gmra.mrb[4].mxu0 %v1167_v14 }
  0x34   : > { %1038 = vmatmul.mubr.bf16.gmra.mrb[4].mxu1 %v1168_v15  ;;  %1025 = vmatprep.mubr.bf16.mxu0 %v1169_v16 }
  0x35   : > { %1041 = vmatprep.mubr.bf16.mxu1 %v1170_v17 }
  0x3b   : > { %1026 = vmatmul.mubr.bf16.gmra.mrb[8].mxu0 %v1171_v18 }
  0x3c   : > { %1042 = vmatmul.mubr.bf16.gmra.mrb[8].mxu1 %v1172_v19  ;;  %1029 = vmatprep.mubr.bf16.mxu0 %v1173_v20 }
  0x3d   : > { %1045 = vmatprep.mubr.bf16.mxu1 %v1174_v21 }
  0x43   : > { %1030 = vmatmul.mubr.bf16.gmra.mrb[12].mxu0 %v1175_v22 }
  0x44   : > { %1046 = vmatmul.mubr.bf16.gmra.mrb[12].mxu1 %v1176_v23 }
  0xfe   : > { %v1019_v25 = vpop.f32.mrb[0].mxu0 }
  0xff   : > { %v1035_v26 = vpop.f32.mrb[0].mxu1  ;;  %v435_v27 = vadd.f32 %v1019_v25, %v1368_v24  ;;  %v426_v29 = vpop.f32.mrb[1].mxu0 }
 0x100   : > { %v499_v28 = vadd.f32 %v1035_v26, %v1368_v24  ;;  %v490_v30 = vpop.f32.mrb[1].mxu1  ;;  %v427_v31 = vadd.f32 %v1368_v24, %v426_v29  ;;  %v1020_v33 = vpop.f32.mrb[2].mxu0 }
 0x101   : > { %v491_v32 = vadd.f32 %v1368_v24, %v490_v30  ;;  %v1036_v34 = vpop.f32.mrb[2].mxu1  ;;  %556 = vst.msk [vmem:[%s1374_s12 + $0x10] sm:$0xff] %vm553_vm0, %v435_v27  ;;  %v438_v35 = vadd.f32 %v1020_v33, %v1368_v24  ;;  %v429_v37 = vpop.f32.mrb[3].mxu0 }
 0x102   : > { %572 = vst.msk [vmem:[%s1374_s12 + $0x90] sm:$0xff] %vm553_vm0, %v499_v28  ;;  %v502_v36 = vadd.f32 %v1036_v34, %v1368_v24  ;;  %v493_v38 = vpop.f32.mrb[3].mxu1  ;;  %554 = vst.msk [vmem:[%s1374_s12] sm:$0xff] %vm553_vm0, %v427_v31  ;;  %v430_v39 = vadd.f32 %v1368_v24, %v429_v37 }
 0x103   : > { %570 = vst.msk [vmem:[%s1374_s12 + $0x80] sm:$0xff] %vm553_vm0, %v491_v32  ;;  %v494_v40 = vadd.f32 %v1368_v24, %v493_v38  ;;  %557 = vst.msk [vmem:[%s1374_s12 + $0x18] sm:$0xff] %vm553_vm0, %v438_v35 }
 0x104   : > { %573 = vst.msk [vmem:[%s1374_s12 + $0x98] sm:$0xff] %vm553_vm0, %v502_v36  ;;  %555 = vst.msk [vmem:[%s1374_s12 + $0x8] sm:$0xff] %vm553_vm0, %v430_v39 }
 0x105   : > { %571 = vst.msk [vmem:[%s1374_s12 + $0x88] sm:$0xff] %vm553_vm0, %v494_v40 }
 0x106   : > { %v1023_v41 = vpop.f32.mrb[4].mxu0 }
 0x107   : > { %v1039_v42 = vpop.f32.mrb[4].mxu1  ;;  %v451_v43 = vadd.f32 %v1023_v41, %v1368_v24  ;;  %v442_v45 = vpop.f32.mrb[5].mxu0 }
 0x108   : > { %v515_v44 = vadd.f32 %v1039_v42, %v1368_v24  ;;  %v506_v46 = vpop.f32.mrb[5].mxu1  ;;  %v443_v47 = vadd.f32 %v1368_v24, %v442_v45  ;;  %v1024_v49 = vpop.f32.mrb[6].mxu0 }
 0x109   : > { %v507_v48 = vadd.f32 %v1368_v24, %v506_v46  ;;  %v1040_v50 = vpop.f32.mrb[6].mxu1  ;;  %560 = vst.msk [vmem:[%s1374_s12 + $0x30] sm:$0xff] %vm553_vm0, %v451_v43  ;;  %v454_v51 = vadd.f32 %v1024_v49, %v1368_v24  ;;  %v445_v53 = vpop.f32.mrb[7].mxu0 }
 0x10a   : > { %576 = vst.msk [vmem:[%s1374_s12 + $0xb0] sm:$0xff] %vm553_vm0, %v515_v44  ;;  %v518_v52 = vadd.f32 %v1040_v50, %v1368_v24  ;;  %v509_v54 = vpop.f32.mrb[7].mxu1  ;;  %558 = vst.msk [vmem:[%s1374_s12 + $0x20] sm:$0xff] %vm553_vm0, %v443_v47  ;;  %v446_v55 = vadd.f32 %v1368_v24, %v445_v53 }
 0x10b   : > { %574 = vst.msk [vmem:[%s1374_s12 + $0xa0] sm:$0xff] %vm553_vm0, %v507_v48  ;;  %v510_v56 = vadd.f32 %v1368_v24, %v509_v54  ;;  %561 = vst.msk [vmem:[%s1374_s12 + $0x38] sm:$0xff] %vm553_vm0, %v454_v51 }
 0x10c   : > { %577 = vst.msk [vmem:[%s1374_s12 + $0xb8] sm:$0xff] %vm553_vm0, %v518_v52  ;;  %559 = vst.msk [vmem:[%s1374_s12 + $0x28] sm:$0xff] %vm553_vm0, %v446_v55 }
 0x10d   : > { %575 = vst.msk [vmem:[%s1374_s12 + $0xa8] sm:$0xff] %vm553_vm0, %v510_v56 }
 0x10e   : > { %v1027_v57 = vpop.f32.mrb[8].mxu0 }
 0x10f   : > { %v1043_v58 = vpop.f32.mrb[8].mxu1  ;;  %v467_v59 = vadd.f32 %v1027_v57, %v1368_v24  ;;  %v458_v61 = vpop.f32.mrb[9].mxu0 }
 0x110   : > { %v531_v60 = vadd.f32 %v1043_v58, %v1368_v24  ;;  %v522_v62 = vpop.f32.mrb[9].mxu1  ;;  %v459_v63 = vadd.f32 %v1368_v24, %v458_v61  ;;  %v1028_v1 = vpop.f32.mrb[10].mxu0 }
 0x111   : > { %v523_v0 = vadd.f32 %v1368_v24, %v522_v62  ;;  %v1044_v2 = vpop.f32.mrb[10].mxu1  ;;  %564 = vst.msk [vmem:[%s1374_s12 + $0x50] sm:$0xff] %vm553_vm0, %v467_v59  ;;  %v470_v3 = vadd.f32 %v1028_v1, %v1368_v24  ;;  %v461_v5 = vpop.f32.mrb[11].mxu0 }
 0x112   : > { %580 = vst.msk [vmem:[%s1374_s12 + $0xd0] sm:$0xff] %vm553_vm0, %v531_v60  ;;  %v534_v4 = vadd.f32 %v1044_v2, %v1368_v24  ;;  %v525_v6 = vpop.f32.mrb[11].mxu1  ;;  %562 = vst.msk [vmem:[%s1374_s12 + $0x40] sm:$0xff] %vm553_vm0, %v459_v63  ;;  %v462_v7 = vadd.f32 %v1368_v24, %v461_v5 }
 0x113   : > { %578 = vst.msk [vmem:[%s1374_s12 + $0xc0] sm:$0xff] %vm553_vm0, %v523_v0  ;;  %v526_v8 = vadd.f32 %v1368_v24, %v525_v6  ;;  %565 = vst.msk [vmem:[%s1374_s12 + $0x58] sm:$0xff] %vm553_vm0, %v470_v3 }
 0x114   : > { %581 = vst.msk [vmem:[%s1374_s12 + $0xd8] sm:$0xff] %vm553_vm0, %v534_v4  ;;  %563 = vst.msk [vmem:[%s1374_s12 + $0x48] sm:$0xff] %vm553_vm0, %v462_v7 }
 0x115   : > { %579 = vst.msk [vmem:[%s1374_s12 + $0xc8] sm:$0xff] %vm553_vm0, %v526_v8 }
 0x116   : > { %v1031_v9 = vpop.f32.mrb[12].mxu0 }
 0x117   : > { %v1047_v10 = vpop.f32.mrb[12].mxu1  ;;  %v483_v11 = vadd.f32 %v1031_v9, %v1368_v24  ;;  %v474_v13 = vpop.f32.mrb[13].mxu0  ;;  %592 = sbr.rel (!%p1310_p4) target bundleno = 342 (0x156), region = 36 }
 0x118   : > { %v547_v12 = vadd.f32 %v1047_v10, %v1368_v24  ;;  %v538_v14 = vpop.f32.mrb[13].mxu1  ;;  %v475_v15 = vadd.f32 %v1368_v24, %v474_v13  ;;  %v1032_v17 = vpop.f32.mrb[14].mxu0 }
 0x119   : > { %v539_v16 = vadd.f32 %v1368_v24, %v538_v14  ;;  %v1048_v18 = vpop.f32.mrb[14].mxu1  ;;  %568 = vst.msk [vmem:[%s1374_s12 + $0x70] sm:$0xff] %vm553_vm0, %v483_v11  ;;  %v486_v19 = vadd.f32 %v1032_v17, %v1368_v24  ;;  %v477_v21 = vpop.f32.mrb[15].mxu0 }
 0x11a   : > { %584 = vst.msk [vmem:[%s1374_s12 + $0xf0] sm:$0xff] %vm553_vm0, %v547_v12  ;;  %v550_v20 = vadd.f32 %v1048_v18, %v1368_v24  ;;  %v541_v22 = vpop.f32.mrb[15].mxu1  ;;  %566 = vst.msk [vmem:[%s1374_s12 + $0x60] sm:$0xff] %vm553_vm0, %v475_v15  ;;  %v478_v23 = vadd.f32 %v1368_v24, %v477_v21 }
 0x11b   : > { %582 = vst.msk [vmem:[%s1374_s12 + $0xe0] sm:$0xff] %vm553_vm0, %v539_v16  ;;  %v542_v25 = vadd.f32 %v1368_v24, %v541_v22  ;;  %569 = vst.msk [vmem:[%s1374_s12 + $0x78] sm:$0xff] %vm553_vm0, %v486_v19 }
 0x11c   : > { %585 = vst.msk [vmem:[%s1374_s12 + $0xf8] sm:$0xff] %vm553_vm0, %v550_v20  ;;  %567 = vst.msk [vmem:[%s1374_s12 + $0x68] sm:$0xff] %vm553_vm0, %v478_v23 }
 0x11d   : > { %583 = vst.msk [vmem:[%s1374_s12 + $0xe8] sm:$0xff] %vm553_vm0, %v542_v25 }
 0x11e   : > { %s1621_s27 = smov (!%p595_p8, %s594_s27), 32 }
 0x11f   : > { %s959_s5 = sshll.u32 %s1621_s27, 7 }
 0x120   : > { %p962_p9 = scmp.eq.s32.totalorder %s959_s5, 0 }
 0x121   : > { %s1481_s6 = sshrl.u32 (!%p962_p9), %s1621_s27, 5 }
 0x122   : > { %603 = sbr.rel (%p962_p9) target bundleno = 342 (0x156), region = 40  ;;  %p963_p10 = scmp.le.s32.totalorder (!%p962_p9), %s1481_s6, 0 }
 0x129   : > { %881 = sbr.rel (%p963_p10) target bundleno = 321 (0x141), region = 116  ;;  %s1612_s15 = smov (!%p963_p10), %s1475_s4 }
 0x12a   : > { %s1613_s20 = smov (!%p963_p10), %s1374_s12  ;;  %s1490_s23 = smov (!%p963_p10), 0  }
 0x12b   : > { %s1492_s7 = smov (!%p963_p10), 0  }
 0x130 LB: >> { %v727_v24 = vld [vmem:[%s1239_s20] sm:$0xff]  ;;  %v729_v26 = vld [vmem:[%s1239_s20 + $0x8] sm:$0xff]  ;;  %v731_v27 = vld [vmem:[%s1239_s20 + $0x10] sm:$0xff]  ;;  %s791_s8 = sadd.s32 1, %s1243_s23  ;;  %s721_s7 = sadd.s32 1, %s1247_s7   ;;  %s1247_s7 = sphi %s1492_s7, %s721_s7   ;;  %s1243_s23 = sphi %s1490_s23, %s1616_s23   ;;  %s1239_s20 = sphi %s1613_s20, %s1615_s20   ;;  %s1235_s15 = sphi %s1612_s15, %s1614_s15  }
 0x131   : >> { %728 = vst [vmem:[%s1235_s15] sm:$0xff] %v727_v24  ;;  %730 = vst [vmem:[%s1235_s15 + $0x8] sm:$0xff] %v729_v26  ;;  %v733_v28 = vld [vmem:[%s1239_s20 + $0x18] sm:$0xff]  ;;  %v735_v29 = vld [vmem:[%s1239_s20 + $0x20] sm:$0xff]  ;;  %p792_p11 = scmp.ge.s32.totalorder %s791_s8, %s1481_s6  ;;  %p720_p12 = scmp.ge.s32.totalorder %s721_s7, %s1481_s6 }
 0x132   : >> { %732 = vst [vmem:[%s1235_s15 + $0x10] sm:$0xff] %v731_v27  ;;  %v737_v30 = vld [vmem:[%s1239_s20 + $0x28] sm:$0xff]  ;;  %734 = vst [vmem:[%s1235_s15 + $0x18] sm:$0xff] %v733_v28  ;;  %v739_v31 = vld [vmem:[%s1239_s20 + $0x30] sm:$0xff] }
 0x133   : >> { %736 = vst [vmem:[%s1235_s15 + $0x20] sm:$0xff] %v735_v29  ;;  %738 = vst [vmem:[%s1235_s15 + $0x28] sm:$0xff] %v737_v30  ;;  %v741_v32 = vld [vmem:[%s1239_s20 + $0x38] sm:$0xff]  ;;  %v743_v33 = vld [vmem:[%s1239_s20 + $0x40] sm:$0xff]  ;;  %s1623_s8 = smov (%p792_p11, %s791_s8), 0 }
 0x134   : >> { %740 = vst [vmem:[%s1235_s15 + $0x30] sm:$0xff] %v739_v31  ;;  %742 = vst [vmem:[%s1235_s15 + $0x38] sm:$0xff] %v741_v32  ;;  %v745_v34 = vld [vmem:[%s1239_s20 + $0x48] sm:$0xff]  ;;  %v747_v35 = vld [vmem:[%s1239_s20 + $0x50] sm:$0xff]  ;;  %s964_s9 = sshll.u32 %s1623_s8, 8  ;;  %s1616_s23 = smov %s1623_s8 }
 0x135   : >> { %744 = vst [vmem:[%s1235_s15 + $0x40] sm:$0xff] %v743_v33  ;;  %v749_v36 = vld [vmem:[%s1239_s20 + $0x58] sm:$0xff]  ;;  %746 = vst [vmem:[%s1235_s15 + $0x48] sm:$0xff] %v745_v34  ;;  %v751_v37 = vld [vmem:[%s1239_s20 + $0x60] sm:$0xff]  ;;  %s1548_s10 = scalar_lea.vmem %s1374_s12, %s964_s9 [#allocation2]   ;;  %s797_s11 = scalar_lea.vmem %s1475_s4, %s964_s9  }
 0x136   : >> { %748 = vst [vmem:[%s1235_s15 + $0x50] sm:$0xff] %v747_v35  ;;  %750 = vst [vmem:[%s1235_s15 + $0x58] sm:$0xff] %v749_v36  ;;  %v753_v38 = vld [vmem:[%s1239_s20 + $0x68] sm:$0xff]  ;;  %v755_v39 = vld [vmem:[%s1239_s20 + $0x70] sm:$0xff] }
 0x137   : >> { %752 = vst [vmem:[%s1235_s15 + $0x60] sm:$0xff] %v751_v37  ;;  %754 = vst [vmem:[%s1235_s15 + $0x68] sm:$0xff] %v753_v38  ;;  %v757_v40 = vld [vmem:[%s1239_s20 + $0x78] sm:$0xff]  ;;  %v759_v41 = vld [vmem:[%s1239_s20 + $0x80] sm:$0xff] }
 0x138   : >> { %756 = vst [vmem:[%s1235_s15 + $0x70] sm:$0xff] %v755_v39  ;;  %v761_v42 = vld [vmem:[%s1239_s20 + $0x88] sm:$0xff]  ;;  %758 = vst [vmem:[%s1235_s15 + $0x78] sm:$0xff] %v757_v40  ;;  %v763_v43 = vld [vmem:[%s1239_s20 + $0x90] sm:$0xff] }
 0x139   : >> { %760 = vst [vmem:[%s1235_s15 + $0x80] sm:$0xff] %v759_v41  ;;  %762 = vst [vmem:[%s1235_s15 + $0x88] sm:$0xff] %v761_v42  ;;  %v765_v44 = vld [vmem:[%s1239_s20 + $0x98] sm:$0xff]  ;;  %v767_v45 = vld [vmem:[%s1239_s20 + $0xa0] sm:$0xff] }
 0x13a   : >> { %764 = vst [vmem:[%s1235_s15 + $0x90] sm:$0xff] %v763_v43  ;;  %766 = vst [vmem:[%s1235_s15 + $0x98] sm:$0xff] %v765_v44  ;;  %v769_v46 = vld [vmem:[%s1239_s20 + $0xa8] sm:$0xff]  ;;  %v771_v47 = vld [vmem:[%s1239_s20 + $0xb0] sm:$0xff]  ;;  %723 = sbr.rel (!%p720_p12) target bundleno = 304 (0x130), region = 122 }
 0x13b   : >> { %768 = vst [vmem:[%s1235_s15 + $0xa0] sm:$0xff] %v767_v45  ;;  %v773_v48 = vld [vmem:[%s1239_s20 + $0xb8] sm:$0xff]  ;;  %770 = vst [vmem:[%s1235_s15 + $0xa8] sm:$0xff] %v769_v46  ;;  %v775_v49 = vld [vmem:[%s1239_s20 + $0xc0] sm:$0xff] }
 0x13c   : >> { %772 = vst [vmem:[%s1235_s15 + $0xb0] sm:$0xff] %v771_v47  ;;  %774 = vst [vmem:[%s1235_s15 + $0xb8] sm:$0xff] %v773_v48  ;;  %v777_v50 = vld [vmem:[%s1239_s20 + $0xc8] sm:$0xff]  ;;  %v779_v51 = vld [vmem:[%s1239_s20 + $0xd0] sm:$0xff] }
 0x13d   : >> { %776 = vst [vmem:[%s1235_s15 + $0xc0] sm:$0xff] %v775_v49  ;;  %778 = vst [vmem:[%s1235_s15 + $0xc8] sm:$0xff] %v777_v50  ;;  %v781_v52 = vld [vmem:[%s1239_s20 + $0xd8] sm:$0xff]  ;;  %v783_v53 = vld [vmem:[%s1239_s20 + $0xe0] sm:$0xff] }
 0x13e   : >> { %780 = vst [vmem:[%s1235_s15 + $0xd0] sm:$0xff] %v779_v51  ;;  %v785_v54 = vld [vmem:[%s1239_s20 + $0xe8] sm:$0xff]  ;;  %782 = vst [vmem:[%s1235_s15 + $0xd8] sm:$0xff] %v781_v52  ;;  %v787_v55 = vld [vmem:[%s1239_s20 + $0xf0] sm:$0xff] }
 0x13f   : >> { %784 = vst [vmem:[%s1235_s15 + $0xe0] sm:$0xff] %v783_v53  ;;  %786 = vst [vmem:[%s1235_s15 + $0xe8] sm:$0xff] %v785_v54  ;;  %v789_v56 = vld [vmem:[%s1239_s20 + $0xf8] sm:$0xff]  ;;  %s1615_s20 = smov %s1548_s10 }
 0x140   : >> { %788 = vst [vmem:[%s1235_s15 + $0xf0] sm:$0xff] %v787_v55  ;;  %790 = vst [vmem:[%s1235_s15 + $0xf8] sm:$0xff] %v789_v56  ;;  %s1614_s15 = smov %s797_s11 }
 0x141 PF: > { %s1589_s14 = sand.u32 31, %s1621_s27   ;;  %s975_s17 = sshll.u32 %s1481_s6, 8 }
 0x142   : > { %s802_s18 = scalar_lea.vmem %s1374_s12, %s975_s17 [#allocation2]   ;;  %s804_s21 = scalar_lea.vmem %s1475_s4, %s975_s17  }
 0x143   : > { %p969_p13 = scmp.le.s32.totalorder %s1589_s14, 0 }
 0x144   : > { %s1249_s22 = smov (!%p969_p13), %s804_s21   ;;  %s1253_s24 = smov (!%p969_p13), %s802_s18  }
 0x145   : > { %895 = sbr.rel (%p969_p13) target bundleno = 342 (0x156), region = 127  ;;  %s1257_s25 = smov (!%p969_p13), 0  }
 0x146   : > { %s1261_s26 = smov (!%p969_p13), 0  }
 0x14c LB: >> { %v814_v57 = vld [vmem:[%s1255_s24] sm:$0xff]  ;;  %s816_s27 = sadd.s32 1, %s1259_s25  ;;  %s808_s26 = sadd.s32 1, %s1263_s26   ;;  %s1263_s26 = sphi %s1261_s26, %s808_s26   ;;  %s1259_s25 = sphi %s1257_s25, %s1258_s25   ;;  %s1255_s24 = sphi %s1253_s24, %s821_s24   ;;  %s1251_s22 = sphi %s1249_s22, %s822_s22  }
 0x14d   : >> { %815 = vst [vmem:[%s1251_s22] sm:$0xff] %v814_v57  ;;  %p817_p0 = scmp.ge.s32.totalorder %s816_s27, %s1589_s14  ;;  %p807_p1 = scmp.ge.s32.totalorder %s808_s26, %s1589_s14 }
 0x14f   : >> { %s1625_s27 = smov (%p817_p0, %s816_s27), 0  ;;  %810 = sbr.rel (!%p807_p1) target bundleno = 332 (0x14c), region = 133 }
 0x150   : >> { %s970_s12 = sshll.u32 %s1625_s27, 3  ;;  %s1258_s25 = smov %s1625_s27  }
 0x151   : >> { %s821_s24 = scalar_lea.vmem %s802_s18, %s970_s12 [#allocation2]   ;;  %s822_s22 = scalar_lea.vmem %s804_s21, %s970_s12  }
 0x156 PF: > { %p10_p2 = scmp.ge.s32.totalorder %s1300_s16, 7   ;;  %s1617_s12 = smov %s1227_s13 }
 0x157   : > { %s1618_s13 = smov %s1308_s19  ;;  %s1619_s14 = smov %s1300_s16 }
 0x158   :  { %12 = sbr.rel (!%p10_p2) target bundleno = 2 (0x2), region = 144 }

</bundles_post_ra>
